<compile_context>
chip_gen: v7x
topology: tpu7x:2x2x1
jax: 0.10.0
libtpu: 0.0.40
codegen_flags: <defaults>
</compile_context>

<pallas_src>
import jax
import jax.numpy as jnp
from jax.experimental import pallas as pl
from jax.experimental.pallas import tpu as pltpu


def _chunk_decoder_kernel(x_ref, w_ref, b_ref, o_ref):
    # x_ref: (TILE_B, C, D)   w_ref: (D, O)   b_ref: (1, O)   o_ref: (TILE_B, O)
    # MaxPool1d over the chunk axis (full reduction -> squeeze).
    pooled = jnp.max(x_ref[...], axis=1)                      # (TILE_B, D)
    # decode: Linear(d_model, out_size); accumulate in f32 on the MXU.
    o_ref[...] = (
        jnp.dot(pooled, w_ref[...], preferred_element_type=jnp.float32)
        + b_ref[...]
    )


def chunk_decoder(x, params, *, tile_b=8):
    """x: (batch, num_chunks, d_model) float32 -> (batch, out_size) float32."""
    B, C, D = x.shape
    w, b = params["w"], params["b"]       # w: (D, O) pre-transposed, b: (1, O)
    O = w.shape[1]

    assert B % tile_b == 0, "batch must be a multiple of tile_b for this demo"
    grid_b = pl.cdiv(B, tile_b)

    cost = pl.CostEstimate(
        flops=2 * B * D * O + B * C * D,                      # matmul + max-pool cmps
        transcendentals=0,
        bytes_accessed=4 * (B * C * D + D * O + O + B * O),
    )

    out = pl.pallas_call(
        _chunk_decoder_kernel,
        out_shape=jax.ShapeDtypeStruct((B, O), jnp.float32),
        grid=(grid_b,),
        in_specs=[
            # x is tiled along batch; chunk & feature dims are full-extent.
            pl.BlockSpec((tile_b, C, D), lambda i: (i, 0, 0)),
            # weights / bias stay VMEM-resident across all grid steps.
            pl.BlockSpec((D, O), lambda i: (0, 0)),
            pl.BlockSpec((1, O), lambda i: (0, 0)),
        ],
        out_specs=pl.BlockSpec((tile_b, O), lambda i: (i, 0)),
        compiler_params=pltpu.CompilerParams(
            dimension_semantics=("parallel",)),
        cost_estimate=cost,
    )(x, w, b)

    return out


def init_params(key, d_model, out_size):
    """Deterministic synthetic parameters matching nn.Linear(d_model, out_size).

    Weight is stored already transposed to (in, out) for the kernel.
    """
    k1, k2 = jax.random.split(key)
    scale = 1.0 / jnp.sqrt(d_model)
    return {
        "w": jax.random.uniform(k1, (d_model, out_size), jnp.float32, -scale, scale),
        "b": jax.random.uniform(k2, (1, out_size), jnp.float32, -scale, scale),
    }


def reference_forward(x, params):
    """Pure-JAX reference of ChunkDecoder.forward for correctness checking."""
    pooled = jnp.max(x, axis=1)                               # MaxPool over chunks
    return pooled @ params["w"] + params["b"][0]


if __name__ == "__main__":
    key = jax.random.PRNGKey(0)
    k_x, k_p = jax.random.split(key)

    batch, num_chunks, d_model, out_size = 16, 8, 32, 16
    x = jax.random.normal(k_x, (batch, num_chunks, d_model), jnp.float32)
    params = init_params(k_p, d_model, out_size)

    out = chunk_decoder(x, params, tile_b=8)
    out = jax.block_until_ready(out)

    ref = reference_forward(x, params)
    assert out.shape == (batch, out_size), out.shape
    assert jnp.allclose(out, ref, atol=1e-5, rtol=1e-5), "mismatch vs reference"

    print("KERNEL_OK")
</pallas_src>

<mosaic_0001>
module attributes {stable_mosaic.version = 11 : i64} {
  func.func @_chunk_decoder_kernel(%arg0: i32, %arg1: memref<8x8x32xf32, #tpu.memory_space<vmem>>, %arg2: memref<32x16xf32, #tpu.memory_space<vmem>>, %arg3: memref<1x16xf32, #tpu.memory_space<vmem>>, %arg4: memref<8x16xf32, #tpu.memory_space<vmem>>) attributes {dimension_semantics = [#tpu.dimension_semantics<parallel>], iteration_bounds = array<i64: 2>, scalar_prefetch = 0 : i64, scratch_operands = 0 : i64, tpu.core_type = #tpu.core_type<tc>, window_params = [{transform_indices = @transform_0, window_bounds = array<i64: 8, 8, 32>}, {pipeline_mode = #tpu.pipeline_mode<synchronous>, transform_indices = @transform_1, window_bounds = array<i64: 32, 16>}, {pipeline_mode = #tpu.pipeline_mode<synchronous>, transform_indices = @transform_2, window_bounds = array<i64: 1, 16>}, {transform_indices = @transform_3, window_bounds = array<i64: 8, 16>}]} {
    %c0 = arith.constant 0 : index
    %c0_0 = arith.constant 0 : index
    %c0_1 = arith.constant 0 : index
    %0 = vector.load %arg1[%c0, %c0_0, %c0_1] : memref<8x8x32xf32, #tpu.memory_space<vmem>>, vector<8x8x32xf32>
    %cst = arith.constant dense<0xFF800000> : vector<8x32xf32>
    %1 = vector.multi_reduction <maximumf>, %0, %cst [1] : vector<8x8x32xf32> to vector<8x32xf32>
    %c0_2 = arith.constant 0 : index
    %c0_3 = arith.constant 0 : index
    %2 = vector.load %arg2[%c0_2, %c0_3] : memref<32x16xf32, #tpu.memory_space<vmem>>, vector<32x16xf32>
    %cst_4 = arith.constant dense<0.000000e+00> : vector<8x16xf32>
    %3 = tpu.matmul %1, %2, %cst_4 {dimension_numbers = #tpu.dot_dimension_numbers<[1], [0], [0], [1], [0, 0, 1, 1], [], []>} : vector<8x32xf32>, vector<32x16xf32>, vector<8x16xf32> -> vector<8x16xf32>
    %c0_5 = arith.constant 0 : index
    %c0_6 = arith.constant 0 : index
    %4 = vector.load %arg3[%c0_5, %c0_6] : memref<1x16xf32, #tpu.memory_space<vmem>>, vector<1x16xf32>
    %5 = vector.broadcast %4 : vector<1x16xf32> to vector<8x16xf32>
    %6 = arith.addf %3, %5 : vector<8x16xf32>
    %c0_7 = arith.constant 0 : index
    %c0_8 = arith.constant 0 : index
    %7 = vector.load %arg4[%c0_7, %c0_8] : memref<8x16xf32, #tpu.memory_space<vmem>>, vector<8x16xf32>
    tpu.vector_store %arg4[%c0_7, %c0_8], %6 {strides = array<i32>} : memref<8x16xf32, #tpu.memory_space<vmem>>, vector<8x16xf32>,
    return
  }
  func.func @transform_0(%arg0: i32) -> (i32, i32, i32) {
    %c0_i32 = arith.constant 0 : i32
    %c0_i32_0 = arith.constant 0 : i32
    %c0_i32_1 = arith.constant 0 : i32
    return %arg0, %c0_i32, %c0_i32_0 : i32, i32, i32
  }
  func.func @transform_1(%arg0: i32) -> (i32, i32) {
    %c0_i32 = arith.constant 0 : i32
    %c0_i32_0 = arith.constant 0 : i32
    %c0_i32_1 = arith.constant 0 : i32
    return %c0_i32, %c0_i32_0 : i32, i32
  }
  func.func @transform_2(%arg0: i32) -> (i32, i32) {
    %c0_i32 = arith.constant 0 : i32
    %c0_i32_0 = arith.constant 0 : i32
    %c0_i32_1 = arith.constant 0 : i32
    return %c0_i32, %c0_i32_0 : i32, i32
  }
  func.func @transform_3(%arg0: i32) -> (i32, i32) {
    %c0_i32 = arith.constant 0 : i32
    %c0_i32_0 = arith.constant 0 : i32
    return %arg0, %c0_i32 : i32, i32
  }
}

</mosaic_0001>

<bundles_post_ra>
// kernel: tpu_custom_call.1
= control target key start
LH: loop header
LB: loop body
LE: loop exit
PB: predicated region body
PF: predicated region fallthrough
CT: control target
= control target key end

     0   :  { %8 = vsyncpa [#allocation3], 0  ;;  %s849_s0 = inlined_call_operand.hbm [shape: f32[16,8,32], index: 0, kind: input, shape index: {}]   ;;  %s850_s1 = inlined_call_operand.vmem [shape: f32[32,16], index: 1, kind: input, shape index: {}]   ;;  %s851_s2 = inlined_call_operand.vmem [shape: f32[1,16], index: 2, kind: input, shape index: {}]   ;;  %s852_s3 = inlined_call_operand.hbm [shape: f32[16,16], index: 3, kind: output, shape index: {}]  }
   0x1   :  { %10 = vsyncpa [#allocation3 + $0x1], 0 }
   0x2   :  { %11 = vsyncpa [#allocation4], 0 }
   0x3   :  { %13 = vsyncpa [#allocation4 + $0x1], 0  ;;  %s660_s12 = smov 0   ;;  %s662_s13 = smov 0  }
   0x4   :  { %s664_s14 = smov 0   ;;  %s666_s15 = smov 0  }
   0x5 LB: > { %s681_s16 = sadd.s32 4294967295, %s631_s15   ;;  %s446_s17 = sadd.s32 4294967294, %s631_s15   ;;  %s631_s15 = sphi %s666_s15, %s865_s15   ;;  %s627_s14 = sphi %s664_s14, %s864_s14   ;;  %s623_s13 = sphi %s662_s13, %s863_s13   ;;  %s619_s12 = sphi %s660_s12, %s862_s12  }
   0x6   : > { %s685_s18 = sadd.s32 1, %s631_s15   ;;  %s26_s19 = sadd.s32 1, %s627_s14 }
   0x7   : > { %s23_s20 = ssub.s32 %s631_s15, %s685_s18  ;;  %p33_p0 = scmp.ne.s32.totalorder %s627_s14, %s623_s13 }
   0x8   : > { %p24_p1 = scmp.eq.s32.totalorder %s23_s20, 0  ;;  %p34_p2 = scmp.eq.s32.totalorder %s631_s15, 0 }
   0x9   : > { %p39_p3 = scmp.ne.s32.totalorder %s623_s13, %s619_s12  ;;  %p40_p4 = scmp.eq.s32.totalorder %s681_s16, 0 }
   0xa   : > { %s697_s21 = scalar_select %p24_p1, %s627_s14, %s26_s19  }
   0xb   : > { %p699_p5 = por %p34_p2, %p33_p0  ;;  %p703_p6 = por %p40_p4, %p39_p3 }
   0xc   : > { %p105_p7 = scmp.eq.s32.totalorder %s681_s16, 1  ;;  %p111_p8 = scmp.eq.s32.totalorder %s446_s17, 1 }
   0xd   : > { %p496_p10 = scmp.lt.s32.totalorder %s631_s15, 2  ;;  %s137_s26 = sand.u32 1, %s627_s14  }
   0xe   : > { %p710_p11 = por %p105_p7, %p33_p0  ;;  %p714_p12 = por %p111_p8, %p39_p3 }
   0xf   : > { %s461_s27 = sshll.u32 %s631_s15, 10  ;;  %s449_s28 = sshll.u32 %s137_s26, 6 }
  0x10   : > { %s856_s24 = scalar_select %p710_p11, 1, 0 }
  0x11   : > { %s857_s25 = scalar_select %p714_p12, 1, 0 }
  0x12   : > { %s723_s4 = scalar_lea.hbm %s849_s0, %s461_s27  ;;  %s141_s5 = scalar_lea.vmem [#allocation2], %s449_s28 }
  0x13   : > { %s148_s6 = sshll.u32 %s141_s5, 4  ;;  %p727_p13 = pnand %p496_p10, %p699_p5  ;;  %s731_s6 = int_to_ptr.vmem [resolvable:$true] %s148_s6 }
  0x14   : > { %s733_s8 = scalar_lea.sflag [#allocation3], %s137_s26  ;;  %s535_s9 = scalar_lea.hbm %s723_s4, 1024 }
  0x15   : > { %p536_p0 = scmp.ne.s32.totalorder %s723_s4, %s535_s9  ;;  %p537_p1 = pneg %p727_p13 }
  0x16   : > { %s540_s17 = scalar_lea.hbm %s849_s0, 2048  ;;  %p541_p4 = scmp.lt.u32.totalorder %s723_s4, %s849_s0 }
  0x17   : > { %p538_p2 = pnand %p537_p1, %p536_p0  ;;  %p542_p5 = scmp.lt.u32.totalorder %s540_s17, %s535_s9 }
  0x18   : > { %p544_p8 = scmp.lt.u32.totalorder %s535_s9, %s723_s4 }
  0x19   : > { %p539_p3 = pneg %p538_p2  ;;  %p543_p7 = por %p542_p5, %p541_p4 }
  0x1b   : > { %p545_p10 = por %p544_p8, %p543_p7 }
  0x1d   : > { %p546_p9 = pnand %p545_p10, %p539_p3 }
  0x1f   : > { %549 = shalt.err (!%p546_p9)
}
  0x20   : > { %s550_s22 = scalar_lea.vmem %s731_s6, 1024  ;;  %s633_s26 = smov [#allocation2]  }
  0x21   : > { %p551_p0 = scmp.ne.s32.totalorder %s731_s6, %s550_s22  ;;  %s555_s27 = sshll.u32 %s633_s26, 4  ;;  %s556_s27 = int_to_ptr.vmem [resolvable:$false] %s555_s27 }
  0x22   : > { %s557_s28 = scalar_lea.vmem %s556_s27, 2048  ;;  %p558_p11 = scmp.lt.s32.totalorder %s731_s6, %s556_s27 }
  0x23   : > { %p553_p2 = pnand %p551_p0, %p537_p1  ;;  %p559_p4 = scmp.lt.s32.totalorder %s557_s28, %s550_s22 }
  0x25   : > { %p554_p12 = pneg %p553_p2  ;;  %p560_p5 = por %p559_p4, %p558_p11 }
  0x27   : > { %p561_p7 = pnand %p560_p5, %p554_p12 }
  0x29   : > { %564 = shalt.err (!%p561_p7)
}
  0x2a   : > { %s634_s29 = smov 128   ;;  %s635_s30 = smov 8  }
  0x2b   : > { %491 = dma.hbm_to_vmem [thread:$0]  (!%p727_p13), %s723_s4, 1024, %s731_s6, %s733_s8, %s634_s29, %s634_s29, %s635_s30  }
  0x2c   : > { %p452_p9 = scmp.ge.s32.totalorder %s631_s15, 1  ;;  %p156_p1 = scmp.lt.s32.totalorder %s631_s15, 3 }
  0x2e   : > { %p157_p3 = pnand %p452_p9, %p156_p1 }
  0x2f   : > { %s764_s5 = sand.u32 (!%p157_p3), 1, %s623_s13  }
  0x30   : > { %160 = sbr.rel (%p157_p3) target bundleno = 307 (0x133), region = 32  ;;  %s453_s9 = sshll.u32 (!%p157_p3), %s764_s5, 6 }
  0x31   : > { %s163_s10 = scalar_lea.sflag (!%p157_p3), [#allocation3], %s764_s5  ;;  %s166_s11 = scalar_lea.vmem (!%p157_p3), [#allocation2], %s453_s9 }
  0x37   : > { %610 = dma.done.wait (%p703_p6), %s163_s10, 1024  }
  0x38   : > { %612 = vsyncadd (%p703_p6), %s163_s10, 4294966272  ;;  %v636_v0 = vmov 0.0|0.0   ;;  %vm637_vm0 = vmmov 0   ;;  %v638_v1 = vmov 0.0   ;;  %vm198_vm1 = vcmask 261120   ;;  %v255_v2 = vld [vmem:[%s850_s1] sm:$0xff] }
  0x39   : > { %478 = vmatprep.subr.bf16.mxu0 %v636_v0  ;;  %475 = vmatprep.mubr.msk.f32.mxu0 %vm637_vm0, %v638_v1  ;;  %v256_v3 = vld [vmem:[%s850_s1 + $0x8] sm:$0xff]  ;;  %v257_v4 = vld [vmem:[%s850_s1 + $0x10] sm:$0xff]  ;;  %v258_v6 = vld [vmem:[%s850_s1 + $0x18] sm:$0xff]  ;;  %vm274_vm2 = vcmask 1041409   ;;  %vm276_vm3 = vcmask 1042434   ;;  %vm278_vm4 = vcmask 1043459  }
  0x3a   : > { %v479_v5 = vpack.c.bf16 %v256_v3, %v255_v2  ;;  %v190_v7 = vld [vmem:[%s166_s11] sm:$0xff]  ;;  %v191_v8 = vld [vmem:[%s166_s11 + $0x8] sm:$0xff]  ;;  %v192_v9 = vld [vmem:[%s166_s11 + $0x10] sm:$0xff]  ;;  %v482_v14 = vpack.c.bf16 %v258_v6, %v257_v4  ;;  %vm280_vm5 = vcmask 1044484   ;;  %vm282_vm6 = vcmask 1045509   ;;  %s454_s22 = sshll.u32 %s764_s5, 3 }
  0x3b   : > { %v193_v10 = vld [vmem:[%s166_s11 + $0x18] sm:$0xff]  ;;  %v194_v11 = vld [vmem:[%s166_s11 + $0x20] sm:$0xff]  ;;  %v199_v12 = vsel %vm198_vm1, %v190_v7, -inf  ;;  %v206_v13 = vsel %vm198_vm1, %v191_v8, -inf  ;;  %v195_v15 = vld [vmem:[%s166_s11 + $0x28] sm:$0xff]  ;;  %v213_v20 = vsel %vm198_vm1, %v192_v9, -inf }
  0x3c   : > { %480 = vmatpush3.bf16.msra.mxu0 %v479_v5  ;;  %v196_v16 = vld [vmem:[%s166_s11 + $0x30] sm:$0xff]  ;;  %v197_v17 = vld [vmem:[%s166_s11 + $0x38] sm:$0xff]  ;;  %v200_v18 = vrot.slane %v199_v12, 4  ;;  %v207_v19 = vrot.slane %v206_v13, 4  ;;  %v214_v21 = vrot.slane %v213_v20, 4  ;;  %v220_v22 = vsel %vm198_vm1, %v193_v10, -inf }
  0x3d   : > { %481 = vmatprep.subr.bf16.mxu0 %v636_v0  ;;  %v227_v23 = vsel %vm198_vm1, %v194_v11, -inf  ;;  %v234_v24 = vsel %vm198_vm1, %v195_v15, -inf  ;;  %v221_v27 = vrot.slane %v220_v22, 4  ;;  %v241_v31 = vsel %vm198_vm1, %v196_v16, -inf  ;;  %v455_v15 = vld [vmem:[%s851_s2] ss:$0 sm:$0xff] }
  0x3e   : > { %v201_v25 = vmax.f32 %v199_v12, %v200_v18  ;;  %v208_v26 = vmax.f32 %v206_v13, %v207_v19  ;;  %v228_v28 = vrot.slane %v227_v23, 4  ;;  %v215_v29 = vmax.f32 %v213_v20, %v214_v21  ;;  %s458_s28 = sshll.u32 %s681_s16, 7  ;;  %s188_s29 = scalar_lea.vmem [#allocation5], %s454_s22 }
  0x3f   : > { %v235_v30 = vrot.slane %v234_v24, 4  ;;  %v248_v32 = vsel %vm198_vm1, %v197_v17, -inf  ;;  %v222_v35 = vmax.f32 %v220_v22, %v221_v27  ;;  %v242_v39 = vrot.slane %v241_v31, 4  ;;  %s376_s30 = sshll.u32 %s188_s29, 4  ;;  %s805_s11 = scalar_lea.hbm %s852_s3, %s458_s28  ;;  %s807_s30 = int_to_ptr.vmem [resolvable:$true] %s376_s30 }
  0x40   : > { %483 = vmatpush3.bf16.msra.mxu0 %v482_v14  ;;  %v202_v33 = vrot.slane %v201_v25, 2  ;;  %v209_v34 = vrot.slane %v208_v26, 2  ;;  %v229_v36 = vmax.f32 %v227_v23, %v228_v28  ;;  %v216_v37 = vrot.slane %v215_v29, 2  ;;  %s363_s4 = scalar_lea.sflag [#allocation4], %s764_s5  ;;  %s565_s6 = scalar_lea.vmem %s807_s30, 128 }
  0x41   : > { %v236_v38 = vmax.f32 %v234_v24, %v235_v30  ;;  %v249_v40 = vrot.slane %v248_v32, 4  ;;  %v223_v43 = vrot.slane %v222_v35, 2  ;;  %v243_v47 = vmax.f32 %v241_v31, %v242_v39  ;;  %p566_p6 = scmp.ne.s32.totalorder %s807_s30, %s565_s6  ;;  %p859_p11 = scmp.ne.s32.totalorder %s856_s24, 0 }
  0x42   : > { %v203_v41 = vmax.f32 %v201_v25, %v202_v33  ;;  %v210_v42 = vmax.f32 %v208_v26, %v209_v34  ;;  %v230_v44 = vrot.slane %v229_v36, 2  ;;  %v217_v45 = vmax.f32 %v215_v29, %v216_v37  ;;  %s639_s16 = smov [#allocation5]  }
  0x43   : > { %v237_v46 = vrot.slane %v236_v38, 2  ;;  %v250_v48 = vmax.f32 %v248_v32, %v249_v40  ;;  %v224_v51 = vmax.f32 %v222_v35, %v223_v43  ;;  %v244_v55 = vrot.slane %v243_v47, 2  ;;  %p567_p12 = pnand %p566_p6, %p859_p11  ;;  %s569_s7 = sshll.u32 %s639_s16, 4  ;;  %s570_s7 = int_to_ptr.vmem [resolvable:$false] %s569_s7 }
  0x44   : > { %v204_v49 = vrot.slane %v203_v41, 1  ;;  %v211_v50 = vrot.slane %v210_v42, 1  ;;  %v231_v52 = vmax.f32 %v229_v36, %v230_v44  ;;  %v218_v53 = vrot.slane %v217_v45, 1  ;;  %s571_s8 = scalar_lea.vmem %s570_s7, 256  ;;  %p572_p8 = scmp.lt.s32.totalorder %s807_s30, %s570_s7 }
  0x45   : > { %v238_v54 = vmax.f32 %v236_v38, %v237_v46  ;;  %v251_v56 = vrot.slane %v250_v48, 2  ;;  %v225_v59 = vrot.slane %v224_v51, 1  ;;  %v245_v63 = vmax.f32 %v243_v47, %v244_v55  ;;  %p568_p13 = pneg %p567_p12  ;;  %p573_p10 = scmp.lt.s32.totalorder %s571_s8, %s565_s6 }
  0x46   : > { %v205_v57 = vmax.f32 %v203_v41, %v204_v49  ;;  %v212_v58 = vmax.f32 %v210_v42, %v211_v50  ;;  %v232_v60 = vrot.slane %v231_v52, 1  ;;  %v219_v61 = vmax.f32 %v217_v45, %v218_v53 }
  0x47   : > { %v239_v62 = vrot.slane %v238_v54, 1  ;;  %v252_v0 = vmax.f32 %v250_v48, %v251_v56  ;;  %v226_v1 = vmax.f32 %v224_v51, %v225_v59  ;;  %v246_v5 = vrot.slane %v245_v63, 1  ;;  %p574_p0 = por %p573_p10, %p572_p8 }
  0x48   : > { %v233_v2 = vmax.f32 %v231_v52, %v232_v60  ;;  %v275_v3 = vsel %vm274_vm2, %v212_v58, %v205_v57  ;;  %vm284_vm7 = vcmask 1046534   ;;  %vm286_vm8 = vcmask 1047559  }
  0x49   : > { %v240_v4 = vmax.f32 %v238_v54, %v239_v62  ;;  %v253_v6 = vrot.slane %v252_v0, 1  ;;  %v277_v7 = vsel %vm276_vm3, %v219_v61, %v275_v3  ;;  %v247_v9 = vmax.f32 %v245_v63, %v246_v5  ;;  %p575_p2 = pnand %p574_p0, %p568_p13 }
  0x4a   : > { %v279_v8 = vsel %vm278_vm4, %v226_v1, %v277_v7  ;;  %vm360_vm9 = vcmask 130048  }
  0x4b   : > { %v254_v10 = vmax.f32 %v252_v0, %v253_v6  ;;  %v281_v11 = vsel %vm280_vm5, %v233_v2, %v279_v8 }
  0x4c   : > { %v283_v12 = vsel %vm282_vm6, %v240_v4, %v281_v11 }
  0x4d   : > { %v285_v13 = vsel %vm284_vm7, %v247_v9, %v283_v12 }
  0x4e   : > { %v287_v14 = vsel %vm286_vm8, %v254_v10, %v285_v13 }
  0x4f   : > { %476 = vmatmul.mubr.msk.f32.vlgmr.msra.gmra.mrb[0].mxu0 %vm198_vm1, %v287_v14 }
 0x122   : > { %v356_v16 = vpop.f32.mrb[0].mxu0 }
 0x123   : > { %v357_v17 = vadd.f32 %v455_v15, %v356_v16  ;;  %v477_v18 = vpop.f32.mrb[1].mxu0 }
 0x125   : > { %361 = vst.msk [vmem:[%s188_s29] sm:$0xff] %vm360_vm9, %v357_v17 }
 0x126   : > { %578 = shalt.err (!%p575_p2)
}
 0x127   : > { %s579_s5 = scalar_lea.hbm %s805_s11, 128  ;;  %s583_s23 = scalar_lea.hbm %s852_s3, 256 }
 0x128   : > { %p580_p4 = scmp.ne.s32.totalorder %s805_s11, %s579_s5  ;;  %p584_p9 = scmp.lt.u32.totalorder %s805_s11, %s852_s3 }
 0x129   : > { %p585_p1 = scmp.lt.u32.totalorder %s583_s23, %s579_s5  ;;  %p587_p6 = scmp.lt.u32.totalorder %s579_s5, %s805_s11 }
 0x12a   : > { %p581_p5 = pnand %p580_p4, %p859_p11 }
 0x12b   : > { %p586_p3 = por %p585_p1, %p584_p9 }
 0x12c   : > { %p582_p7 = pneg %p581_p5 }
 0x12d   : > { %p588_p12 = por %p587_p6, %p586_p3 }
 0x12f   : > { %p589_p13 = pnand %p588_p12, %p582_p7 }
 0x131   : > { %592 = shalt.err (!%p589_p13)
}
 0x132   : > { %486 = dma.vmem_to_hbm [thread:$0]  (%p859_p11), %s807_s30, 128, %s805_s11, %s363_s4  }
 0x133 PF: > { %s388_s26 = sand.u32 1, %s619_s12   ;;  %p860_p8 = scmp.ne.s32.totalorder %s857_s25, 0 }
 0x134   : > { %p861_p10 = scmp.ge.s32.totalorder %s631_s15, 2  ;;  %s389_s27 = scalar_lea.sflag [#allocation4], %s388_s26 }
 0x136   : > { %p493_p0 = pnand %p861_p10, %p860_p8 }
 0x138   : > { %614 = dma.done.wait (!%p493_p0), %s389_s27, 128  }
 0x139   : > { %616 = vsyncadd (!%p493_p0), %s389_s27, 4294967168  ;;  %p16_p2 = scmp.ge.s32.totalorder %s685_s18, 4   ;;  %s862_s12 = smov %s623_s13 }
 0x13a   : > { %s863_s13 = smov %s627_s14  ;;  %s864_s14 = smov %s697_s21 }
 0x13b   : > { %s865_s15 = smov %s685_s18  ;;  %18 = sbr.rel (!%p16_p2) target bundleno = 5 (0x5), region = 77 }
 0x142   :  { %394 = vsyncpa [#allocation3], 1 }
 0x143   :  { %396 = vsyncpa [#allocation3 + $0x1], 1 }
 0x144   :  { %397 = vsyncpa [#allocation4], 1 }
 0x145   :  { %399 = vsyncpa [#allocation4 + $0x1], 1 }

</bundles_post_ra>
